<compile_context>
chip_gen: v5e
topology: v5e:2x2
jax: 0.10.0
libtpu: 0.0.40
codegen_flags: <defaults>
</compile_context>

<pallas_src>
import jax
import jax.numpy as jnp
from jax import lax
from jax.experimental import pallas as pl
from jax.experimental.pallas import tpu as pltpu


_SQRT_HALF = 0.7071067811865476


def _gelu_exact(x):
    # PyTorch nn.GELU() default: 0.5 * x * (1 + erf(x / sqrt(2)))
    return 0.5 * x * (1.0 + lax.erf(x * _SQRT_HALF))


def feedforward_kernel(x_ref, gamma_ref, beta_ref, w1_ref, b1_ref, w2_ref, b2_ref,
                       o_ref, xn_ref, acc_ref):
    j = pl.program_id(1)

    # First hidden chunk for this row tile: LayerNorm once in f32, cache the
    # normalized activations in the MXU compute dtype, zero the f32 accumulator.
    @pl.when(j == 0)
    def _():
        x = x_ref[...].astype(jnp.float32)                     # (tile_rows, D)
        mean = jnp.mean(x, axis=-1, keepdims=True)
        xc = x - mean
        var = jnp.mean(xc * xc, axis=-1, keepdims=True)        # biased, matches PyTorch LN
        inv = lax.rsqrt(var + 1e-5)
        xn = xc * inv * gamma_ref[...] + beta_ref[...]
        xn_ref[...] = xn.astype(xn_ref.dtype)
        acc_ref[...] = jnp.zeros_like(acc_ref)

    # Linear1 chunk: bf16 x bf16 -> f32 accumulate, bias + exact GELU in f32.
    h = jnp.dot(xn_ref[...], w1_ref[...], preferred_element_type=jnp.float32)
    h = _gelu_exact(h + b1_ref[...])                           # (tile_rows, tile_h)

    # Linear2 chunk, accumulated into the f32 scratch.
    acc_ref[...] += jnp.dot(h.astype(w2_ref.dtype), w2_ref[...],
                            preferred_element_type=jnp.float32)

    # Last hidden chunk: add output bias and write back (Dropout p=0 == identity).
    @pl.when(j == pl.num_programs(1) - 1)
    def _():
        o_ref[...] = (acc_ref[...] + b2_ref[...]).astype(o_ref.dtype)


def _spec(shape, index_map, mode):
    if mode is None:
        return pl.BlockSpec(shape, index_map)
    return pl.BlockSpec(shape, index_map, pipeline_mode=mode)


def _build_ffn_call(rows_p, D, H, tile_rows, tile_h, compute_dtype, out_dtype,
                    vmem_limit_bytes, cost_estimate, single_buffer_consts):
    n_h = H // tile_h
    # Grid-invariant params can be single-buffered to halve their VMEM footprint.
    const_mode = pl.Buffered(1) if single_buffer_consts else None
    # Weight chunks are grid-invariant only when H is not blocked.
    weight_mode = pl.Buffered(1) if (single_buffer_consts and n_h == 1) else None

    in_specs = [
        _spec((tile_rows, D), lambda i, j: (i, 0), None),          # x rows
        _spec((1, D), lambda i, j: (0, 0), const_mode),            # gamma
        _spec((1, D), lambda i, j: (0, 0), const_mode),            # beta
        _spec((D, tile_h), lambda i, j: (0, j), weight_mode),      # W1
        _spec((1, tile_h), lambda i, j: (0, j), weight_mode),      # b1
        _spec((tile_h, D), lambda i, j: (j, 0), weight_mode),      # W2
        _spec((1, D), lambda i, j: (0, 0), const_mode),            # b2
    ]
    out_specs = pl.BlockSpec((tile_rows, D), lambda i, j: (i, 0))

    return pl.pallas_call(
        feedforward_kernel,
        out_shape=jax.ShapeDtypeStruct((rows_p, D), out_dtype),
        grid_spec=pltpu.PrefetchScalarGridSpec(
            num_scalar_prefetch=0,
            grid=(rows_p // tile_rows, n_h),
            in_specs=in_specs,
            out_specs=out_specs,
            scratch_shapes=[
                pltpu.VMEM((tile_rows, D), compute_dtype),   # cached LayerNorm output
                pltpu.VMEM((tile_rows, D), jnp.float32),     # f32 output accumulator
            ],
        ),
        compiler_params=pltpu.CompilerParams(
            dimension_semantics=("parallel", "arbitrary"),
            vmem_limit_bytes=vmem_limit_bytes,
        ),
        cost_estimate=cost_estimate,
    )


def feedforward(x, gamma, beta, w1, b1, w2, b2, *,
                tile_rows=256, tile_hidden=512,
                compute_dtype=jnp.bfloat16,
                vmem_limit_bytes=48 * 1024 * 1024):
    B, S, D = x.shape
    Dw, H = w1.shape
    assert Dw == D and w2.shape == (H, D)
    rows = B * S

    # Row tiling: multiple of 8 sublanes, clamped to the problem size; ragged row
    # counts (e.g. B*S = 2*197) are zero-padded rather than asserted away.
    tile_rows = max(8, min(int(tile_rows), ((rows + 7) // 8) * 8))
    tile_rows = ((tile_rows + 7) // 8) * 8
    rows_p = pl.cdiv(rows, tile_rows) * tile_rows

    # Hidden-dim blocking (second, "arbitrary" grid axis). Only block when it divides
    # evenly; otherwise run the full hidden dim in one chunk.
    tile_h = min(int(tile_hidden), H)
    if H % tile_h != 0:
        tile_h = H

    x2 = x.reshape(rows, D)
    if rows_p != rows:
        x2 = jnp.pad(x2, ((0, rows_p - rows), (0, 0)))

    gamma2 = gamma.reshape(1, D).astype(jnp.float32)
    beta2 = beta.reshape(1, D).astype(jnp.float32)
    b1_2 = b1.reshape(1, H).astype(jnp.float32)
    b2_2 = b2.reshape(1, D).astype(jnp.float32)
    w1c = w1.astype(compute_dtype)      # bf16 MXU operands, f32 accumulation
    w2c = w2.astype(compute_dtype)

    out_itemsize = jnp.dtype(x.dtype).itemsize
    cost = pl.CostEstimate(
        flops=4 * rows_p * D * H,                         # two (rows x D x H) matmuls
        transcendentals=rows_p * H,                       # erf inside GELU
        bytes_accessed=(x2.size * x2.dtype.itemsize
                        + rows_p * D * out_itemsize
                        + w1c.size * w1c.dtype.itemsize
                        + w2c.size * w2c.dtype.itemsize
                        + (gamma2.size + beta2.size + b1_2.size + b2_2.size) * 4),
    )

    def run(single_buffer_consts):
        call = _build_ffn_call(rows_p, D, H, tile_rows, tile_h, compute_dtype,
                               x.dtype, vmem_limit_bytes, cost, single_buffer_consts)
        return call(x2, gamma2, beta2, w1c, b1_2, w2c, b2_2)

    try:
        out = run(single_buffer_consts=True)
    except Exception:
        # pl.Buffered(1) unavailable in this JAX build -> default double-buffering.
        out = run(single_buffer_consts=False)

    return out[:rows].reshape(B, S, D)


if __name__ == "__main__":
    # Small shapes consistent with the module: batch=2, seq=8, dim=32, hidden=64
    B, S, D, H = 2, 8, 32, 64

    key = jax.random.PRNGKey(0)
    kx, kw1, kb1, kw2, kb2, kx2 = jax.random.split(key, 6)

    x = jax.random.normal(kx, (B, S, D), dtype=jnp.float32)
    gamma = jnp.ones((D,), dtype=jnp.float32)   # PyTorch LayerNorm affine init
    beta = jnp.zeros((D,), dtype=jnp.float32)
    w1 = jax.random.normal(kw1, (D, H), dtype=jnp.float32) * 0.02
    b1 = jax.random.normal(kb1, (H,), dtype=jnp.float32) * 0.02
    w2 = jax.random.normal(kw2, (H, D), dtype=jnp.float32) * 0.02
    b2 = jax.random.normal(kb2, (D,), dtype=jnp.float32) * 0.02

    def reference(xx, match_bf16):
        xc = xx - xx.mean(-1, keepdims=True)
        xn = xc * lax.rsqrt((xc * xc).mean(-1, keepdims=True) + 1e-5)
        xn = xn * gamma + beta
        if match_bf16:
            h = jnp.dot(xn.astype(jnp.bfloat16), w1.astype(jnp.bfloat16),
                        preferred_element_type=jnp.float32) + b1
        else:
            h = xn @ w1 + b1
        h = 0.5 * h * (1.0 + lax.erf(h * _SQRT_HALF))
        if match_bf16:
            y = jnp.dot(h.astype(jnp.bfloat16), w2.astype(jnp.bfloat16),
                        preferred_element_type=jnp.float32) + b2
        else:
            y = h @ w2 + b2
        return y

    y = feedforward(x, gamma, beta, w1, b1, w2, b2)
    jax.block_until_ready(y)
    assert jnp.allclose(y, reference(x, True), atol=2e-3, rtol=2e-3), "mismatch vs bf16 reference"
    assert jnp.allclose(y, reference(x, False), atol=5e-3, rtol=5e-2), "mismatch vs f32 reference"

    # Ragged row count (B*S not a multiple of the row tile) exercises the padding path.
    x_odd = jax.random.normal(kx2, (B, 7, D), dtype=jnp.float32)
    y_odd = feedforward(x_odd, gamma, beta, w1, b1, w2, b2)
    jax.block_until_ready(y_odd)
    assert jnp.allclose(y_odd, reference(x_odd, True), atol=2e-3, rtol=2e-3), "ragged mismatch"

    print("KERNEL_OK")
</pallas_src>

<mosaic_0001>
module attributes {stable_mosaic.version = 11 : i64} {
  func.func @feedforward_kernel(%arg0: i32, %arg1: i32, %arg2: memref<16x32xf32, #tpu.memory_space<vmem>>, %arg3: memref<1x32xf32, #tpu.memory_space<vmem>>, %arg4: memref<1x32xf32, #tpu.memory_space<vmem>>, %arg5: memref<32x64xbf16, #tpu.memory_space<vmem>>, %arg6: memref<1x64xf32, #tpu.memory_space<vmem>>, %arg7: memref<64x32xbf16, #tpu.memory_space<vmem>>, %arg8: memref<1x32xf32, #tpu.memory_space<vmem>>, %arg9: memref<16x32xf32, #tpu.memory_space<vmem>>, %arg10: memref<16x32xbf16, #tpu.memory_space<vmem>>, %arg11: memref<16x32xf32, #tpu.memory_space<vmem>>) attributes {dimension_semantics = [#tpu.dimension_semantics<parallel>, #tpu.dimension_semantics<arbitrary>], iteration_bounds = array<i64: 1, 1>, scalar_prefetch = 0 : i64, scratch_operands = 2 : i64, tpu.core_type = #tpu.core_type<tc>, window_params = [{transform_indices = @transform_0, window_bounds = array<i64: 16, 32>}, {pipeline_mode = #tpu.pipeline_mode<synchronous>, transform_indices = @transform_1, window_bounds = array<i64: 1, 32>}, {pipeline_mode = #tpu.pipeline_mode<synchronous>, transform_indices = @transform_2, window_bounds = array<i64: 1, 32>}, {pipeline_mode = #tpu.pipeline_mode<synchronous>, transform_indices = @transform_3, window_bounds = array<i64: 32, 64>}, {pipeline_mode = #tpu.pipeline_mode<synchronous>, transform_indices = @transform_4, window_bounds = array<i64: 1, 64>}, {pipeline_mode = #tpu.pipeline_mode<synchronous>, transform_indices = @transform_5, window_bounds = array<i64: 64, 32>}, {pipeline_mode = #tpu.pipeline_mode<synchronous>, transform_indices = @transform_6, window_bounds = array<i64: 1, 32>}, {transform_indices = @transform_7, window_bounds = array<i64: 16, 32>}]} {
    %c0_i32 = arith.constant 0 : i32
    %0 = arith.cmpi eq, %arg1, %c0_i32 : i32
    %1 = arith.extui %0 : i1 to i32
    %c0_i32_0 = arith.constant 0 : i32
    %2 = arith.cmpi ne, %1, %c0_i32_0 : i32
    scf.if %2 {
      %c0_18 = arith.constant 0 : index
      %c0_19 = arith.constant 0 : index
      %26 = vector.load %arg2[%c0_18, %c0_19] : memref<16x32xf32, #tpu.memory_space<vmem>>, vector<16x32xf32>
      %cst_20 = arith.constant dense<0.000000e+00> : vector<16xf32>
      %27 = vector.multi_reduction <add>, %26, %cst_20 [1] : vector<16x32xf32> to vector<16xf32>
      %28 = vector.shape_cast %27 : vector<16xf32> to vector<16x1xf32>
      %cst_21 = arith.constant 3.200000e+01 : f32
      %29 = vector.broadcast %cst_21 : f32 to vector<16x1xf32>
      %30 = arith.divf %28, %29 : vector<16x1xf32>
      %31 = vector.broadcast %30 : vector<16x1xf32> to vector<16x32xf32>
      %32 = arith.subf %26, %31 : vector<16x32xf32>
      %33 = arith.mulf %32, %32 : vector<16x32xf32>
      %cst_22 = arith.constant dense<0.000000e+00> : vector<16xf32>
      %34 = vector.multi_reduction <add>, %33, %cst_22 [1] : vector<16x32xf32> to vector<16xf32>
      %35 = vector.shape_cast %34 : vector<16xf32> to vector<16x1xf32>
      %cst_23 = arith.constant 3.200000e+01 : f32
      %36 = vector.broadcast %cst_23 : f32 to vector<16x1xf32>
      %37 = arith.divf %35, %36 : vector<16x1xf32>
      %cst_24 = arith.constant 9.99999974E-6 : f32
      %38 = vector.broadcast %cst_24 : f32 to vector<16x1xf32>
      %39 = arith.addf %37, %38 : vector<16x1xf32>
      %40 = math.rsqrt %39 : vector<16x1xf32>
      %41 = vector.broadcast %40 : vector<16x1xf32> to vector<16x32xf32>
      %42 = arith.mulf %32, %41 : vector<16x32xf32>
      %c0_25 = arith.constant 0 : index
      %c0_26 = arith.constant 0 : index
      %43 = vector.load %arg3[%c0_25, %c0_26] : memref<1x32xf32, #tpu.memory_space<vmem>>, vector<1x32xf32>
      %44 = vector.broadcast %43 : vector<1x32xf32> to vector<16x32xf32>
      %45 = arith.mulf %42, %44 : vector<16x32xf32>
      %c0_27 = arith.constant 0 : index
      %c0_28 = arith.constant 0 : index
      %46 = vector.load %arg4[%c0_27, %c0_28] : memref<1x32xf32, #tpu.memory_space<vmem>>, vector<1x32xf32>
      %47 = vector.broadcast %46 : vector<1x32xf32> to vector<16x32xf32>
      %48 = arith.addf %45, %47 : vector<16x32xf32>
      %49 = arith.truncf %48 : vector<16x32xf32> to vector<16x32xbf16>
      %c0_29 = arith.constant 0 : index
      %c0_30 = arith.constant 0 : index
      %50 = vector.load %arg10[%c0_29, %c0_30] : memref<16x32xbf16, #tpu.memory_space<vmem>>, vector<16x32xbf16>
      tpu.vector_store %arg10[%c0_29, %c0_30], %49 {strides = array<i32>} : memref<16x32xbf16, #tpu.memory_space<vmem>>, vector<16x32xbf16>,
      %cst_31 = arith.constant 0.000000e+00 : f32
      %51 = vector.broadcast %cst_31 : f32 to vector<16x32xf32>
      %c0_32 = arith.constant 0 : index
      %c0_33 = arith.constant 0 : index
      %52 = vector.load %arg11[%c0_32, %c0_33] : memref<16x32xf32, #tpu.memory_space<vmem>>, vector<16x32xf32>
      tpu.vector_store %arg11[%c0_32, %c0_33], %51 {strides = array<i32>} : memref<16x32xf32, #tpu.memory_space<vmem>>, vector<16x32xf32>,
    } else {
    }
    %c0 = arith.constant 0 : index
    %c0_1 = arith.constant 0 : index
    %3 = vector.load %arg10[%c0, %c0_1] : memref<16x32xbf16, #tpu.memory_space<vmem>>, vector<16x32xbf16>
    %c0_2 = arith.constant 0 : index
    %c0_3 = arith.constant 0 : index
    %4 = vector.load %arg5[%c0_2, %c0_3] : memref<32x64xbf16, #tpu.memory_space<vmem>>, vector<32x64xbf16>
    %cst = arith.constant dense<0.000000e+00> : vector<16x64xf32>
    %5 = tpu.matmul %3, %4, %cst {dimension_numbers = #tpu.dot_dimension_numbers<[1], [0], [0], [1], [0, 0, 1, 1], [], []>} : vector<16x32xbf16>, vector<32x64xbf16>, vector<16x64xf32> -> vector<16x64xf32>
    %c0_4 = arith.constant 0 : index
    %c0_5 = arith.constant 0 : index
    %6 = vector.load %arg6[%c0_4, %c0_5] : memref<1x64xf32, #tpu.memory_space<vmem>>, vector<1x64xf32>
    %7 = vector.broadcast %6 : vector<1x64xf32> to vector<16x64xf32>
    %8 = arith.addf %5, %7 : vector<16x64xf32>
    %cst_6 = arith.constant 5.000000e-01 : f32
    %9 = vector.broadcast %cst_6 : f32 to vector<16x64xf32>
    %10 = arith.mulf %9, %8 : vector<16x64xf32>
    %cst_7 = arith.constant 0.707106769 : f32
    %11 = vector.broadcast %cst_7 : f32 to vector<16x64xf32>
    %12 = arith.mulf %8, %11 : vector<16x64xf32>
    %13 = math.erf %12 : vector<16x64xf32>
    %cst_8 = arith.constant 1.000000e+00 : f32
    %14 = vector.broadcast %cst_8 : f32 to vector<16x64xf32>
    %15 = arith.addf %14, %13 : vector<16x64xf32>
    %16 = arith.mulf %10, %15 : vector<16x64xf32>
    %c0_9 = arith.constant 0 : index
    %c0_10 = arith.constant 0 : index
    %17 = vector.load %arg11[%c0_9, %c0_10] : memref<16x32xf32, #tpu.memory_space<vmem>>, vector<16x32xf32>
    %18 = arith.truncf %16 : vector<16x64xf32> to vector<16x64xbf16>
    %c0_11 = arith.constant 0 : index
    %c0_12 = arith.constant 0 : index
    %19 = vector.load %arg7[%c0_11, %c0_12] : memref<64x32xbf16, #tpu.memory_space<vmem>>, vector<64x32xbf16>
    %cst_13 = arith.constant dense<0.000000e+00> : vector<16x32xf32>
    %20 = tpu.matmul %18, %19, %cst_13 {dimension_numbers = #tpu.dot_dimension_numbers<[1], [0], [0], [1], [0, 0, 1, 1], [], []>} : vector<16x64xbf16>, vector<64x32xbf16>, vector<16x32xf32> -> vector<16x32xf32>
    %21 = arith.addf %17, %20 : vector<16x32xf32>
    %c0_14 = arith.constant 0 : index
    %c0_15 = arith.constant 0 : index
    %22 = vector.load %arg11[%c0_14, %c0_15] : memref<16x32xf32, #tpu.memory_space<vmem>>, vector<16x32xf32>
    tpu.vector_store %arg11[%c0_14, %c0_15], %21 {strides = array<i32>} : memref<16x32xf32, #tpu.memory_space<vmem>>, vector<16x32xf32>,
    %c0_i32_16 = arith.constant 0 : i32
    %23 = arith.cmpi eq, %arg1, %c0_i32_16 : i32
    %24 = arith.extui %23 : i1 to i32
    %c0_i32_17 = arith.constant 0 : i32
    %25 = arith.cmpi ne, %24, %c0_i32_17 : i32
    scf.if %25 {
      %c0_18 = arith.constant 0 : index
      %c0_19 = arith.constant 0 : index
      %26 = vector.load %arg11[%c0_18, %c0_19] : memref<16x32xf32, #tpu.memory_space<vmem>>, vector<16x32xf32>
      %c0_20 = arith.constant 0 : index
      %c0_21 = arith.constant 0 : index
      %27 = vector.load %arg8[%c0_20, %c0_21] : memref<1x32xf32, #tpu.memory_space<vmem>>, vector<1x32xf32>
      %28 = vector.broadcast %27 : vector<1x32xf32> to vector<16x32xf32>
      %29 = arith.addf %26, %28 : vector<16x32xf32>
      %c0_22 = arith.constant 0 : index
      %c0_23 = arith.constant 0 : index
      %30 = vector.load %arg9[%c0_22, %c0_23] : memref<16x32xf32, #tpu.memory_space<vmem>>, vector<16x32xf32>
      tpu.vector_store %arg9[%c0_22, %c0_23], %29 {strides = array<i32>} : memref<16x32xf32, #tpu.memory_space<vmem>>, vector<16x32xf32>,
    } else {
    }
    return
  }
  func.func @transform_0(%arg0: i32, %arg1: i32) -> (i32, i32) {
    %c0_i32 = arith.constant 0 : i32
    %c0_i32_0 = arith.constant 0 : i32
    return %arg0, %c0_i32 : i32, i32
  }
  func.func @transform_1(%arg0: i32, %arg1: i32) -> (i32, i32) {
    %c0_i32 = arith.constant 0 : i32
    %c0_i32_0 = arith.constant 0 : i32
    %c0_i32_1 = arith.constant 0 : i32
    return %c0_i32, %c0_i32_0 : i32, i32
  }
  func.func @transform_2(%arg0: i32, %arg1: i32) -> (i32, i32) {
    %c0_i32 = arith.constant 0 : i32
    %c0_i32_0 = arith.constant 0 : i32
    %c0_i32_1 = arith.constant 0 : i32
    return %c0_i32, %c0_i32_0 : i32, i32
  }
  func.func @transform_3(%arg0: i32, %arg1: i32) -> (i32, i32) {
    %c0_i32 = arith.constant 0 : i32
    %c0_i32_0 = arith.constant 0 : i32
    return %c0_i32, %arg1 : i32, i32
  }
  func.func @transform_4(%arg0: i32, %arg1: i32) -> (i32, i32) {
    %c0_i32 = arith.constant 0 : i32
    %c0_i32_0 = arith.constant 0 : i32
    return %c0_i32, %arg1 : i32, i32
  }
  func.func @transform_5(%arg0: i32, %arg1: i32) -> (i32, i32) {
    %c0_i32 = arith.constant 0 : i32
    %c0_i32_0 = arith.constant 0 : i32
    return %arg1, %c0_i32 : i32, i32
  }
  func.func @transform_6(%arg0: i32, %arg1: i32) -> (i32, i32) {
    %c0_i32 = arith.constant 0 : i32
    %c0_i32_0 = arith.constant 0 : i32
    %c0_i32_1 = arith.constant 0 : i32
    return %c0_i32, %c0_i32_0 : i32, i32
  }
  func.func @transform_7(%arg0: i32, %arg1: i32) -> (i32, i32) {
    %c0_i32 = arith.constant 0 : i32
    %c0_i32_0 = arith.constant 0 : i32
    return %arg0, %c0_i32 : i32, i32
  }
}

module attributes {stable_mosaic.version = 11 : i64} {
  func.func @feedforward_kernel(%arg0: i32, %arg1: i32, %arg2: memref<16x32xf32, #tpu.memory_space<vmem>>, %arg3: memref<1x32xf32, #tpu.memory_space<vmem>>, %arg4: memref<1x32xf32, #tpu.memory_space<vmem>>, %arg5: memref<32x64xbf16, #tpu.memory_space<vmem>>, %arg6: memref<1x64xf32, #tpu.memory_space<vmem>>, %arg7: memref<64x32xbf16, #tpu.memory_space<vmem>>, %arg8: memref<1x32xf32, #tpu.memory_space<vmem>>, %arg9: memref<16x32xf32, #tpu.memory_space<vmem>>, %arg10: memref<16x32xbf16, #tpu.memory_space<vmem>>, %arg11: memref<16x32xf32, #tpu.memory_space<vmem>>) attributes {dimension_semantics = [#tpu.dimension_semantics<parallel>, #tpu.dimension_semantics<arbitrary>], iteration_bounds = array<i64: 1, 1>, scalar_prefetch = 0 : i64, scratch_operands = 2 : i64, tpu.core_type = #tpu.core_type<tc>, window_params = [{transform_indices = @transform_0, window_bounds = array<i64: 16, 32>}, {pipeline_mode = #tpu.pipeline_mode<synchronous>, transform_indices = @transform_1, window_bounds = array<i64: 1, 32>}, {pipeline_mode = #tpu.pipeline_mode<synchronous>, transform_indices = @transform_2, window_bounds = array<i64: 1, 32>}, {transform_indices = @transform_3, window_bounds = array<i64: 32, 64>}, {transform_indices = @transform_4, window_bounds = array<i64: 1, 64>}, {transform_indices = @transform_5, window_bounds = array<i64: 64, 32>}, {pipeline_mode = #tpu.pipeline_mode<synchronous>, transform_indices = @transform_6, window_bounds = array<i64: 1, 32>}, {transform_indices = @transform_7, window_bounds = array<i64: 16, 32>}]} {
    %c0_i32 = arith.constant 0 : i32
    %0 = arith.cmpi eq, %arg1, %c0_i32 : i32
    %1 = arith.extui %0 : i1 to i32
    %c0_i32_0 = arith.constant 0 : i32
    %2 = arith.cmpi ne, %1, %c0_i32_0 : i32
    scf.if %2 {
      %c0_18 = arith.constant 0 : index
      %c0_19 = arith.constant 0 : index
      %26 = vector.load %arg2[%c0_18, %c0_19] : memref<16x32xf32, #tpu.memory_space<vmem>>, vector<16x32xf32>
      %cst_20 = arith.constant dense<0.000000e+00> : vector<16xf32>
      %27 = vector.multi_reduction <add>, %26, %cst_20 [1] : vector<16x32xf32> to vector<16xf32>
      %28 = vector.shape_cast %27 : vector<16xf32> to vector<16x1xf32>
      %cst_21 = arith.constant 3.200000e+01 : f32
      %29 = vector.broadcast %cst_21 : f32 to vector<16x1xf32>
      %30 = arith.divf %28, %29 : vector<16x1xf32>
      %31 = vector.broadcast %30 : vector<16x1xf32> to vector<16x32xf32>
      %32 = arith.subf %26, %31 : vector<16x32xf32>
      %33 = arith.mulf %32, %32 : vector<16x32xf32>
      %cst_22 = arith.constant dense<0.000000e+00> : vector<16xf32>
      %34 = vector.multi_reduction <add>, %33, %cst_22 [1] : vector<16x32xf32> to vector<16xf32>
      %35 = vector.shape_cast %34 : vector<16xf32> to vector<16x1xf32>
      %cst_23 = arith.constant 3.200000e+01 : f32
      %36 = vector.broadcast %cst_23 : f32 to vector<16x1xf32>
      %37 = arith.divf %35, %36 : vector<16x1xf32>
      %cst_24 = arith.constant 9.99999974E-6 : f32
      %38 = vector.broadcast %cst_24 : f32 to vector<16x1xf32>
      %39 = arith.addf %37, %38 : vector<16x1xf32>
      %40 = math.rsqrt %39 : vector<16x1xf32>
      %41 = vector.broadcast %40 : vector<16x1xf32> to vector<16x32xf32>
      %42 = arith.mulf %32, %41 : vector<16x32xf32>
      %c0_25 = arith.constant 0 : index
      %c0_26 = arith.constant 0 : index
      %43 = vector.load %arg3[%c0_25, %c0_26] : memref<1x32xf32, #tpu.memory_space<vmem>>, vector<1x32xf32>
      %44 = vector.broadcast %43 : vector<1x32xf32> to vector<16x32xf32>
      %45 = arith.mulf %42, %44 : vector<16x32xf32>
      %c0_27 = arith.constant 0 : index
      %c0_28 = arith.constant 0 : index
      %46 = vector.load %arg4[%c0_27, %c0_28] : memref<1x32xf32, #tpu.memory_space<vmem>>, vector<1x32xf32>
      %47 = vector.broadcast %46 : vector<1x32xf32> to vector<16x32xf32>
      %48 = arith.addf %45, %47 : vector<16x32xf32>
      %49 = arith.truncf %48 : vector<16x32xf32> to vector<16x32xbf16>
      %c0_29 = arith.constant 0 : index
      %c0_30 = arith.constant 0 : index
      %50 = vector.load %arg10[%c0_29, %c0_30] : memref<16x32xbf16, #tpu.memory_space<vmem>>, vector<16x32xbf16>
      tpu.vector_store %arg10[%c0_29, %c0_30], %49 {strides = array<i32>} : memref<16x32xbf16, #tpu.memory_space<vmem>>, vector<16x32xbf16>,
      %cst_31 = arith.constant 0.000000e+00 : f32
      %51 = vector.broadcast %cst_31 : f32 to vector<16x32xf32>
      %c0_32 = arith.constant 0 : index
      %c0_33 = arith.constant 0 : index
      %52 = vector.load %arg11[%c0_32, %c0_33] : memref<16x32xf32, #tpu.memory_space<vmem>>, vector<16x32xf32>
      tpu.vector_store %arg11[%c0_32, %c0_33], %51 {strides = array<i32>} : memref<16x32xf32, #tpu.memory_space<vmem>>, vector<16x32xf32>,
    } else {
    }
    %c0 = arith.constant 0 : index
    %c0_1 = arith.constant 0 : index
    %3 = vector.load %arg10[%c0, %c0_1] : memref<16x32xbf16, #tpu.memory_space<vmem>>, vector<16x32xbf16>
    %c0_2 = arith.constant 0 : index
    %c0_3 = arith.constant 0 : index
    %4 = vector.load %arg5[%c0_2, %c0_3] : memref<32x64xbf16, #tpu.memory_space<vmem>>, vector<32x64xbf16>
    %cst = arith.constant dense<0.000000e+00> : vector<16x64xf32>
    %5 = tpu.matmul %3, %4, %cst {dimension_numbers = #tpu.dot_dimension_numbers<[1], [0], [0], [1], [0, 0, 1, 1], [], []>} : vector<16x32xbf16>, vector<32x64xbf16>, vector<16x64xf32> -> vector<16x64xf32>
    %c0_4 = arith.constant 0 : index
    %c0_5 = arith.constant 0 : index
    %6 = vector.load %arg6[%c0_4, %c0_5] : memref<1x64xf32, #tpu.memory_space<vmem>>, vector<1x64xf32>
    %7 = vector.broadcast %6 : vector<1x64xf32> to vector<16x64xf32>
    %8 = arith.addf %5, %7 : vector<16x64xf32>
    %cst_6 = arith.constant 5.000000e-01 : f32
    %9 = vector.broadcast %cst_6 : f32 to vector<16x64xf32>
    %10 = arith.mulf %9, %8 : vector<16x64xf32>
    %cst_7 = arith.constant 0.707106769 : f32
    %11 = vector.broadcast %cst_7 : f32 to vector<16x64xf32>
    %12 = arith.mulf %8, %11 : vector<16x64xf32>
    %13 = math.erf %12 : vector<16x64xf32>
    %cst_8 = arith.constant 1.000000e+00 : f32
    %14 = vector.broadcast %cst_8 : f32 to vector<16x64xf32>
    %15 = arith.addf %14, %13 : vector<16x64xf32>
    %16 = arith.mulf %10, %15 : vector<16x64xf32>
    %c0_9 = arith.constant 0 : index
    %c0_10 = arith.constant 0 : index
    %17 = vector.load %arg11[%c0_9, %c0_10] : memref<16x32xf32, #tpu.memory_space<vmem>>, vector<16x32xf32>
    %18 = arith.truncf %16 : vector<16x64xf32> to vector<16x64xbf16>
    %c0_11 = arith.constant 0 : index
    %c0_12 = arith.constant 0 : index
    %19 = vector.load %arg7[%c0_11, %c0_12] : memref<64x32xbf16, #tpu.memory_space<vmem>>, vector<64x32xbf16>
    %cst_13 = arith.constant dense<0.000000e+00> : vector<16x32xf32>
    %20 = tpu.matmul %18, %19, %cst_13 {dimension_numbers = #tpu.dot_dimension_numbers<[1], [0], [0], [1], [0, 0, 1, 1], [], []>} : vector<16x64xbf16>, vector<64x32xbf16>, vector<16x32xf32> -> vector<16x32xf32>
    %21 = arith.addf %17, %20 : vector<16x32xf32>
    %c0_14 = arith.constant 0 : index
    %c0_15 = arith.constant 0 : index
    %22 = vector.load %arg11[%c0_14, %c0_15] : memref<16x32xf32, #tpu.memory_space<vmem>>, vector<16x32xf32>
    tpu.vector_store %arg11[%c0_14, %c0_15], %21 {strides = array<i32>} : memref<16x32xf32, #tpu.memory_space<vmem>>, vector<16x32xf32>,
    %c0_i32_16 = arith.constant 0 : i32
    %23 = arith.cmpi eq, %arg1, %c0_i32_16 : i32
    %24 = arith.extui %23 : i1 to i32
    %c0_i32_17 = arith.constant 0 : i32
    %25 = arith.cmpi ne, %24, %c0_i32_17 : i32
    scf.if %25 {
      %c0_18 = arith.constant 0 : index
      %c0_19 = arith.constant 0 : index
      %26 = vector.load %arg11[%c0_18, %c0_19] : memref<16x32xf32, #tpu.memory_space<vmem>>, vector<16x32xf32>
      %c0_20 = arith.constant 0 : index
      %c0_21 = arith.constant 0 : index
      %27 = vector.load %arg8[%c0_20, %c0_21] : memref<1x32xf32, #tpu.memory_space<vmem>>, vector<1x32xf32>
      %28 = vector.broadcast %27 : vector<1x32xf32> to vector<16x32xf32>
      %29 = arith.addf %26, %28 : vector<16x32xf32>
      %c0_22 = arith.constant 0 : index
      %c0_23 = arith.constant 0 : index
      %30 = vector.load %arg9[%c0_22, %c0_23] : memref<16x32xf32, #tpu.memory_space<vmem>>, vector<16x32xf32>
      tpu.vector_store %arg9[%c0_22, %c0_23], %29 {strides = array<i32>} : memref<16x32xf32, #tpu.memory_space<vmem>>, vector<16x32xf32>,
    } else {
    }
    return
  }
  func.func @transform_0(%arg0: i32, %arg1: i32) -> (i32, i32) {
    %c0_i32 = arith.constant 0 : i32
    %c0_i32_0 = arith.constant 0 : i32
    return %arg0, %c0_i32 : i32, i32
  }
  func.func @transform_1(%arg0: i32, %arg1: i32) -> (i32, i32) {
    %c0_i32 = arith.constant 0 : i32
    %c0_i32_0 = arith.constant 0 : i32
    %c0_i32_1 = arith.constant 0 : i32
    return %c0_i32, %c0_i32_0 : i32, i32
  }
  func.func @transform_2(%arg0: i32, %arg1: i32) -> (i32, i32) {
    %c0_i32 = arith.constant 0 : i32
    %c0_i32_0 = arith.constant 0 : i32
    %c0_i32_1 = arith.constant 0 : i32
    return %c0_i32, %c0_i32_0 : i32, i32
  }
  func.func @transform_3(%arg0: i32, %arg1: i32) -> (i32, i32) {
    %c0_i32 = arith.constant 0 : i32
    %c0_i32_0 = arith.constant 0 : i32
    return %c0_i32, %arg1 : i32, i32
  }
  func.func @transform_4(%arg0: i32, %arg1: i32) -> (i32, i32) {
    %c0_i32 = arith.constant 0 : i32
    %c0_i32_0 = arith.constant 0 : i32
    return %c0_i32, %arg1 : i32, i32
  }
  func.func @transform_5(%arg0: i32, %arg1: i32) -> (i32, i32) {
    %c0_i32 = arith.constant 0 : i32
    %c0_i32_0 = arith.constant 0 : i32
    return %arg1, %c0_i32 : i32, i32
  }
  func.func @transform_6(%arg0: i32, %arg1: i32) -> (i32, i32) {
    %c0_i32 = arith.constant 0 : i32
    %c0_i32_0 = arith.constant 0 : i32
    %c0_i32_1 = arith.constant 0 : i32
    return %c0_i32, %c0_i32_0 : i32, i32
  }
  func.func @transform_7(%arg0: i32, %arg1: i32) -> (i32, i32) {
    %c0_i32 = arith.constant 0 : i32
    %c0_i32_0 = arith.constant 0 : i32
    return %arg0, %c0_i32 : i32, i32
  }
}

</mosaic_0001>

<bundles_post_ra>
// kernel: tpu_custom_call.1
= control target key start
LH: loop header
LB: loop body
LE: loop exit
PB: predicated region body
PF: predicated region fallthrough
CT: control target
= control target key end

     0   :  { %vm34_vm0 = vcmask 261120   ;;  %s523_s0 = inlined_call_operand.vmem [shape: f32[16,32], index: 0, kind: input, shape index: {}]   ;;  %s524_s1 = inlined_call_operand.vmem [shape: f32[1,32], index: 1, kind: input, shape index: {}]   ;;  %s525_s2 = inlined_call_operand.vmem [shape: f32[1,32], index: 2, kind: input, shape index: {}]   ;;  %s526_s3 = inlined_call_operand.vmem [shape: bf16[32,64], index: 3, kind: input, shape index: {}]   ;;  %s527_s4 = inlined_call_operand.vmem [shape: f32[1,64], index: 4, kind: input, shape index: {}]   ;;  %s528_s5 = inlined_call_operand.vmem [shape: bf16[64,32], index: 5, kind: input, shape index: {}]   ;;  %s529_s6 = inlined_call_operand.vmem [shape: f32[1,32], index: 6, kind: input, shape index: {}]   ;;  %s530_s7 = inlined_call_operand.hbm [shape: f32[16,32], index: 7, kind: output, shape index: {}]  }
   0x1   :  { %v32_v0 = vld [vmem:[%s523_s0] sm:$0xff] }
   0x2   :  { %v35_v1 = vsel %vm34_vm0, %v32_v0, 0.0 }
   0x3   :  { %36 = vadd.xlane.f32.xlu0 %v35_v1 }
   0x4   :  { %12 = vsyncpa [#allocation5], 0  ;;  %v33_v2 = vld [vmem:[%s523_s0 + $0x8] sm:$0xff]  ;;  %v410_v4 = vmov 32.0   ;;  %v359_v27 = vld [vmem:[%s526_s3] sm:$0xff]  ;;  %vm100_vm6 = vcmask 257024  }
   0x5   :  { %v38_v3 = vsel %vm34_vm0, %v33_v2, 0.0  ;;  %374 = vrcp.f32 %v410_v4  ;;  %v360_v24 = vld [vmem:[%s526_s3 + $0x8] sm:$0xff]  ;;  %v370_v37 = vld [vmem:[%s524_s1] ss:$0 sm:$0xff]  ;;  %s412_s19 = smov [#allocation4]   ;;  %s314_s23 = sshll.u32 %s530_s7, 4  ;;  %s315_s23 = int_to_ptr.hbm [resolvable:$true] %s314_s23 }
   0x6   :  { %142 = vmatpush.bf16.msra.mxu0 %v360_v24  ;;  %v371_v40 = vld [vmem:[%s525_s2] ss:$0 sm:$0xff]  ;;  %s312_s20 = sshll.u32 %s412_s19, 4  ;;  %s414_s24 = smov 8   ;;  %s313_s20 = int_to_ptr.vmem [resolvable:$true] %s312_s20 }
   0x7   :  { %v372_v54 = vld [vmem:[%s527_s4] ss:$0 sm:$0xff] }
   0xa   :  { %143 = vmatpush.bf16.msra.mxu0 %v359_v27 }
   0xb   :  { %39 = vadd.xlane.f32.xlu0 %v38_v3  ;;  %v375_v5 = vpop.eup %374 }
   0xc   :  { %v42_v6 = vmul.f32 32.0, %v375_v5  ;;  %vm46_vm1 = vweird.f32 %v375_v5 }
   0xe   :  { %v43_v7 = vsub.f32 1.0, %v42_v6 }
  0x10   :  { %v44_v8 = vmul.f32 %v375_v5, %v43_v7 }
  0x12   :  { %v45_v9 = vadd.f32 %v375_v5, %v44_v8 }
  0x14   :  { %v47_v10 = vsel %vm46_vm1, %v375_v5, %v45_v9  ;;  %v364_v9 = vld [vmem:[%s528_s5 + $0x18] sm:$0xff] }
  0x15   :  { %281 = vmatpush.bf16.msra.mxu1 %v364_v9 }
  0x76   :  { %v37_v11 = vpop.xlane.xlu0 %36 }
  0x77   :  { %v48_v12 = vmul.f32 %v47_v10, %v37_v11 }
  0x79   :  { %v50_v13 = vsub.f32 %v32_v0, %v48_v12 }
  0x7b   :  { %v52_v14 = vmul.f32 %v50_v13, %v50_v13 }
  0x7d   :  { %v54_v15 = vsel %vm34_vm0, %v52_v14, 0.0 }
  0x7e   :  { %55 = vadd.xlane.f32.xlu1 %v54_v15  ;;  %v40_v16 = vpop.xlane.xlu0 %39 }
  0x7f   :  { %v49_v17 = vmul.f32 %v47_v10, %v40_v16 }
  0x81   :  { %v51_v18 = vsub.f32 %v33_v2, %v49_v17  ;;  %v363_v17 = vld [vmem:[%s528_s5 + $0x10] sm:$0xff] }
  0x82   :  { %282 = vmatpush.bf16.msra.mxu1 %v363_v17 }
  0x83   :  { %v53_v19 = vmul.f32 %v51_v18, %v51_v18 }
  0x85   :  { %v57_v20 = vsel %vm34_vm0, %v53_v19, 0.0 }
  0x86   :  { %58 = vadd.xlane.f32.xlu1 %v57_v20 }
  0xf1   :  { %v56_v21 = vpop.xlane.xlu1 %55 }
  0xf2   :  { %v60_v22 = vmul.f32 %v56_v21, %v47_v10 }
  0xf4   :  { %v62_v23 = vadd.f32 1e-05, %v60_v22 }
  0xf6   :  { %376 = vrsqrt.f32 %v62_v23  ;;  %vm70_vm3 = vweird.f32 %v62_v23 }
  0xf9   :  { %v59_v25 = vpop.xlane.xlu1 %58 }
  0xfa   :  { %v61_v26 = vmul.f32 %v59_v25, %v47_v10  ;;  %v362_v25 = vld [vmem:[%s528_s5 + $0x8] sm:$0xff] }
  0xfb   :  { %283 = vmatpush.bf16.msra.mxu1 %v362_v25 }
  0xfc   :  { %v377_v28 = vpop.eup %376  ;;  %v63_v29 = vadd.f32 1e-05, %v61_v26 }
  0xfd   :  { %v65_v30 = vmul.f32 %v377_v28, %v62_v23  ;;  %vm71_vm2 = vweird.f32 %v377_v28 }
  0xfe   :  { %378 = vrsqrt.f32 %v63_v29  ;;  %vm72_vm4 = vmor %vm70_vm3, %vm71_vm2  ;;  %vm80_vm7 = vweird.f32 %v63_v29  ;;  %vm273_vm2 = vcmask 523264  }
  0xff   :  { %v66_v31 = vmul.f32 %v377_v28, %v65_v30 }
 0x101   :  { %v67_v32 = vmul.f32 0.5, %v66_v31  ;;  %v361_v31 = vld [vmem:[%s528_s5] sm:$0xff] }
 0x102   :  { %284 = vmatpush.bf16.msra.mxu1 %v361_v31 }
 0x103   :  { %v68_v33 = vsub.f32 1.5, %v67_v32 }
 0x104   :  { %v379_v34 = vpop.eup %378 }
 0x105   :  { %v69_v35 = vmul.f32 %v377_v28, %v68_v33  ;;  %v75_v36 = vmul.f32 %v379_v34, %v63_v29  ;;  %vm81_vm5 = vweird.f32 %v379_v34 }
 0x106   :  { %vm82_vm8 = vmor %vm80_vm7, %vm81_vm5 }
 0x107   :  { %v73_v38 = vsel %vm72_vm4, %v377_v28, %v69_v35  ;;  %v76_v39 = vmul.f32 %v379_v34, %v75_v36 }
 0x108   :  { %v84_v41 = vmul.f32 %v73_v38, %v50_v13 }
 0x109   :  { %v77_v42 = vmul.f32 0.5, %v76_v39 }
 0x10a   :  { %v90_v43 = vmul.f32 %v370_v37, %v84_v41 }
 0x10b   :  { %v78_v44 = vsub.f32 1.5, %v77_v42 }
 0x10c   :  { %v96_v45 = vadd.f32 %v371_v40, %v90_v43 }
 0x10d   :  { %v79_v46 = vmul.f32 %v379_v34, %v78_v44 }
 0x10e   :  { %v98_v47 = vpack.c.bf16 %v96_v45, %v96_v45 }
 0x10f   :  { %v83_v48 = vsel %vm82_vm8, %v379_v34, %v79_v46 }
 0x110   :  { %101 = vst.msk [vmem:[#allocation2] sm:$0xf] %vm100_vm6, %v98_v47  ;;  %v85_v49 = vmul.f32 %v83_v48, %v51_v18 }
 0x112   :  { %v91_v50 = vmul.f32 %v370_v37, %v85_v49  ;;  %v411_v37 = vmov 0.0  }
 0x113   :  { %103 = vst.msk [vmem:[#allocation3] sm:$0xff] %vm34_vm0, %v411_v37 }
 0x114   :  { %v97_v51 = vadd.f32 %v371_v40, %v91_v50  ;;  %104 = vst.msk [vmem:[#allocation3 + $0x8] sm:$0xff] %vm34_vm0, %v411_v37 }
 0x116   :  { %v99_v52 = vpack.c.bf16 %v97_v51, %v97_v51 }
 0x118   :  { %102 = vst.msk [vmem:[#allocation2 + $0x4] sm:$0xf] %vm100_vm6, %v99_v52 }
 0x11f   :  { %v358_v53 = vld [vmem:[#allocation2] sm:$0xff] }
 0x120   :  { %338 = vmatmul.msk.bf16.vlgmr.msra.gmra.mxu0 %vm34_vm0, %v358_v53 }
 0x19d   :  { %v145_v55 = vpop.f32.mrf.mxu0 }
 0x19e   :  { %v481_v56 = vadd.f32 %v372_v54, %v145_v55 }
 0x1a0   :  { %v484_v57 = vmul.f32 0.70710677, %v481_v56 }
 0x1a2   :  { %v154_v58 = vmul.f32 %v484_v57, %v484_v57 }
 0x1a4   :  { %v155_v59 = vmin.f32 %v154_v58, 16.0 }
 0x1a5   :  { %v147_v60 = vpop.f32.mrf.mxu0 }
 0x1a6   :  { %v156_v61 = vmul.f32 2.1237322e-06, %v155_v59  ;;  %v167_v62 = vmul.f32 3.8918573e-05, %v155_v59  ;;  %v488_v63 = vadd.f32 %v372_v54, %v147_v60 }
 0x1a8   :  { %v157_v0 = vadd.f32 0.00028619796, %v156_v61  ;;  %v168_v1 = vadd.f32 0.001143296, %v167_v62  ;;  %v491_v2 = vmul.f32 0.70710677, %v488_v63 }
 0x1aa   :  { %v169_v3 = vmul.f32 %v168_v1, %v155_v59  ;;  %v194_v4 = vmul.f32 %v491_v2, %v491_v2  ;;  %v158_v5 = vmul.f32 %v157_v0, %v155_v59 }
 0x1ac   :  { %v170_v6 = vadd.f32 0.014752088, %v169_v3  ;;  %v195_v7 = vmin.f32 %v194_v4, 16.0  ;;  %v159_v12 = vadd.f32 0.0036580483, %v158_v5 }
 0x1ae   :  { %v171_v8 = vmul.f32 %v170_v6, %v155_v59  ;;  %v196_v10 = vmul.f32 2.1237322e-06, %v195_v7  ;;  %v207_v11 = vmul.f32 3.8918573e-05, %v195_v7  ;;  %v160_v20 = vmul.f32 %v159_v12, %v155_v59 }
 0x1af   :  { %v150_v12 = vmul.f32 0.5, %v481_v56 }
 0x1b0   :  { %v172_v13 = vadd.f32 0.112945676, %v171_v8  ;;  %v197_v14 = vadd.f32 0.00028619796, %v196_v10  ;;  %v208_v15 = vadd.f32 0.001143296, %v207_v11 }
 0x1b1   :  { %v161_v27 = vadd.f32 0.05243302, %v160_v20 }
 0x1b2   :  { %v173_v16 = vmul.f32 %v172_v13, %v155_v59  ;;  %v198_v18 = vmul.f32 %v197_v14, %v195_v7  ;;  %v209_v19 = vmul.f32 %v208_v15, %v195_v7  ;;  %v151_v13 = vmul.f32 0.5, %v488_v63 }
 0x1b3   :  { %v162_v33 = vmul.f32 %v161_v27, %v155_v59 }
 0x1b4   :  { %v174_v21 = vadd.f32 0.4994258, %v173_v16  ;;  %v199_v22 = vadd.f32 0.0036580483, %v198_v18  ;;  %v210_v23 = vadd.f32 0.014752088, %v209_v19 }
 0x1b5   :  { %v163_v39 = vadd.f32 0.18741608, %v162_v33  ;;  %v238_v18 = vld [vmem:[#allocation3] sm:$0xff] }
 0x1b6   :  { %v175_v24 = vmul.f32 %v174_v21, %v155_v59  ;;  %v211_v26 = vmul.f32 %v210_v23, %v195_v7  ;;  %v200_v29 = vmul.f32 %v199_v22, %v195_v7  ;;  %v373_v21 = vld [vmem:[%s529_s6] ss:$0 sm:$0xff]  ;;  %s413_s6 = smov 128  }
 0x1b7   :  { %v164_v44 = vmul.f32 %v163_v39, %v155_v59 }
 0x1b8   :  { %v176_v28 = vadd.f32 1.0, %v175_v24  ;;  %v212_v30 = vadd.f32 0.112945676, %v211_v26  ;;  %v201_v34 = vadd.f32 0.05243302, %v200_v29 }
 0x1b9   :  { %v165_v50 = vadd.f32 1.1283791, %v164_v44 }
 0x1ba   :  { %380 = vrcp.f32 %v176_v28  ;;  %v213_v32 = vmul.f32 %v212_v30, %v195_v7  ;;  %v202_v41 = vmul.f32 %v201_v34, %v195_v7  ;;  %v188_v46 = vand.u32 2147483648, %v176_v28 }
 0x1bb   :  { %v186_v48 = vand.u32 2147483647, %v176_v28  ;;  %vm182_vm10 = vweird.f32 %v176_v28  ;;  %v166_v60 = vmul.f32 %v165_v50, %v484_v57 }
 0x1bc   :  { %v214_v35 = vadd.f32 0.4994258, %v213_v32  ;;  %v203_v47 = vadd.f32 0.18741608, %v202_v41  ;;  %v189_v53 = vor.u32 1.1754944e-38, %v188_v46 }
 0x1bd   :  { %vm187_vm12 = vcmp.eq.f32.partialorder %v186_v48, 8.507059e+37 }
 0x1be   :  { %v215_v36 = vmul.f32 %v214_v35, %v195_v7  ;;  %v204_v54 = vmul.f32 %v203_v47, %v195_v7 }
 0x1c0   :  { %v381_v38 = vpop.eup %380  ;;  %v216_v42 = vadd.f32 1.0, %v215_v36  ;;  %v205_v59 = vadd.f32 1.1283791, %v204_v54 }
 0x1c1   :  { %v178_v40 = vmul.f32 %v381_v38, %v176_v28  ;;  %vm183_vm9 = vweird.f32 %v381_v38 }
 0x1c2   :  { %382 = vrcp.f32 %v216_v42  ;;  %vm184_vm11 = vmor %vm182_vm10, %vm183_vm9  ;;  %v228_v62 = vand.u32 2147483648, %v216_v42  ;;  %v226_v3 = vand.u32 2147483647, %v216_v42  ;;  %vm222_vm14 = vweird.f32 %v216_v42 }
 0x1c3   :  { %v179_v43 = vsub.f32 1.0, %v178_v40  ;;  %v206_v8 = vmul.f32 %v205_v59, %v491_v2  ;;  %v239_v2 = vld [vmem:[#allocation3 + $0x8] sm:$0xff] }
 0x1c4   :  { %v229_v5 = vor.u32 1.1754944e-38, %v228_v62  ;;  %vm227_vm1 = vcmp.eq.f32.partialorder %v226_v3, 8.507059e+37 }
 0x1c5   :  { %v180_v45 = vmul.f32 %v381_v38, %v179_v43 }
 0x1c7   :  { %v181_v49 = vadd.f32 %v381_v38, %v180_v45 }
 0x1c8   :  { %v383_v51 = vpop.eup %382 }
 0x1c9   :  { %v185_v52 = vsel %vm184_vm11, %v381_v38, %v181_v49  ;;  %v218_v55 = vmul.f32 %v383_v51, %v216_v42  ;;  %vm223_vm13 = vweird.f32 %v383_v51 }
 0x1ca   :  { %v190_v58 = vsel %vm187_vm12, %v189_v53, %v185_v52  ;;  %vm224_vm15 = vmor %vm222_vm14, %vm223_vm13 }
 0x1cb   :  { %v219_v61 = vsub.f32 1.0, %v218_v55  ;;  %v191_v0 = vmul.f32 %v190_v58, %v166_v60 }
 0x1cd   :  { %v220_v1 = vmul.f32 %v383_v51, %v219_v61  ;;  %v339_v6 = vclamps-f32 %v191_v0, 1.0 }
 0x1cf   :  { %v221_v4 = vadd.f32 %v383_v51, %v220_v1  ;;  %v234_v11 = vadd.f32 1.0, %v339_v6 }
 0x1d1   :  { %v225_v7 = vsel %vm224_vm15, %v383_v51, %v221_v4  ;;  %v236_v15 = vmul.f32 %v234_v11, %v150_v12 }
 0x1d2   :  { %v230_v9 = vsel %vm227_vm1, %v229_v5, %v225_v7 }
 0x1d3   :  { %v231_v10 = vmul.f32 %v230_v9, %v206_v8 }
 0x1d5   :  { %v340_v57 = vclamps-f32 %v231_v10, 1.0 }
 0x1d7   :  { %v235_v14 = vadd.f32 1.0, %v340_v57 }
 0x1d9   :  { %v237_v16 = vmul.f32 %v235_v14, %v151_v13 }
 0x1db   :  { %v240_v17 = vpack.c.bf16 %v237_v16, %v236_v15 }
 0x1dd   :  { %357 = vmatmul.msk.bf16.vlgmr.msra.gmra.mxu1 %vm273_vm2, %v240_v17 }
 0x25a   :  { %v286_v19 = vpop.f32.mrf.mxu1 }
 0x25b   :  { %v291_v20 = vadd.f32 %v286_v19, %v238_v18 }
 0x25d   :  { %293 = vst.msk [vmem:[#allocation3] sm:$0xff] %vm34_vm0, %v291_v20 }
 0x262   :  { %v288_v22 = vpop.f32.mrf.mxu1 }
 0x263   :  { %v292_v56 = vadd.f32 %v288_v22, %v239_v2 }
 0x264   :  { %v298_v23 = vld [vmem:[#allocation3] sm:$0xff] }
 0x265   :  { %294 = vst.msk [vmem:[#allocation3 + $0x8] sm:$0xff] %vm34_vm0, %v292_v56  ;;  %v304_v63 = vadd.f32 %v373_v21, %v298_v23 }
 0x267   :  { %306 = vst.msk [vmem:[#allocation4] sm:$0xff] %vm34_vm0, %v304_v63 }
 0x26c   :  { %v299_v24 = vld [vmem:[#allocation3 + $0x8] sm:$0xff] }
 0x26d   :  { %v305_v25 = vadd.f32 %v373_v21, %v299_v24 }
 0x26f   :  { %307 = vst.msk [vmem:[#allocation4 + $0x8] sm:$0xff] %vm34_vm0, %v305_v25 }
 0x270   :  { %320 = dma.vmem_to_hbm [thread:$0]  %s313_s20, 256, %s315_s23, [#allocation5], %s413_s6, %s413_s6, %s414_s24  }
 0x271   :  { %408 = dma.done.wait [#allocation5], 256  }
 0x272   :  { %409 = vsyncadd [#allocation5], 4294967040 }
 0x273   :  { %325 = vsyncpa [#allocation5], 1 }

// kernel: tpu_custom_call.1
= control target key start
LH: loop header
LB: loop body
LE: loop exit
PB: predicated region body
PF: predicated region fallthrough
CT: control target
= control target key end

     0   :  { %vm34_vm0 = vcmask 261120   ;;  %s523_s0 = inlined_call_operand.vmem [shape: f32[16,32], index: 0, kind: input, shape index: {}]   ;;  %s524_s1 = inlined_call_operand.vmem [shape: f32[1,32], index: 1, kind: input, shape index: {}]   ;;  %s525_s2 = inlined_call_operand.vmem [shape: f32[1,32], index: 2, kind: input, shape index: {}]   ;;  %s526_s3 = inlined_call_operand.vmem [shape: bf16[32,64], index: 3, kind: input, shape index: {}]   ;;  %s527_s4 = inlined_call_operand.vmem [shape: f32[1,64], index: 4, kind: input, shape index: {}]   ;;  %s528_s5 = inlined_call_operand.vmem [shape: bf16[64,32], index: 5, kind: input, shape index: {}]   ;;  %s529_s6 = inlined_call_operand.vmem [shape: f32[1,32], index: 6, kind: input, shape index: {}]   ;;  %s530_s7 = inlined_call_operand.hbm [shape: f32[16,32], index: 7, kind: output, shape index: {}]  }
   0x1   :  { %v32_v0 = vld [vmem:[%s523_s0] sm:$0xff] }
   0x2   :  { %v35_v1 = vsel %vm34_vm0, %v32_v0, 0.0 }
   0x3   :  { %36 = vadd.xlane.f32.xlu0 %v35_v1 }
   0x4   :  { %12 = vsyncpa [#allocation5], 0  ;;  %v33_v2 = vld [vmem:[%s523_s0 + $0x8] sm:$0xff]  ;;  %v410_v4 = vmov 32.0   ;;  %v359_v27 = vld [vmem:[%s526_s3] sm:$0xff]  ;;  %vm100_vm6 = vcmask 257024  }
   0x5   :  { %v38_v3 = vsel %vm34_vm0, %v33_v2, 0.0  ;;  %374 = vrcp.f32 %v410_v4  ;;  %v360_v24 = vld [vmem:[%s526_s3 + $0x8] sm:$0xff]  ;;  %v370_v37 = vld [vmem:[%s524_s1] ss:$0 sm:$0xff]  ;;  %s412_s19 = smov [#allocation4]   ;;  %s314_s23 = sshll.u32 %s530_s7, 4  ;;  %s315_s23 = int_to_ptr.hbm [resolvable:$true] %s314_s23 }
   0x6   :  { %142 = vmatpush.bf16.msra.mxu0 %v360_v24  ;;  %v371_v40 = vld [vmem:[%s525_s2] ss:$0 sm:$0xff]  ;;  %s312_s20 = sshll.u32 %s412_s19, 4  ;;  %s414_s24 = smov 8   ;;  %s313_s20 = int_to_ptr.vmem [resolvable:$true] %s312_s20 }
   0x7   :  { %v372_v54 = vld [vmem:[%s527_s4] ss:$0 sm:$0xff] }
   0xa   :  { %143 = vmatpush.bf16.msra.mxu0 %v359_v27 }
   0xb   :  { %39 = vadd.xlane.f32.xlu0 %v38_v3  ;;  %v375_v5 = vpop.eup %374 }
   0xc   :  { %v42_v6 = vmul.f32 32.0, %v375_v5  ;;  %vm46_vm1 = vweird.f32 %v375_v5 }
   0xe   :  { %v43_v7 = vsub.f32 1.0, %v42_v6 }
  0x10   :  { %v44_v8 = vmul.f32 %v375_v5, %v43_v7 }
  0x12   :  { %v45_v9 = vadd.f32 %v375_v5, %v44_v8 }
  0x14   :  { %v47_v10 = vsel %vm46_vm1, %v375_v5, %v45_v9  ;;  %v364_v9 = vld [vmem:[%s528_s5 + $0x18] sm:$0xff] }
  0x15   :  { %281 = vmatpush.bf16.msra.mxu1 %v364_v9 }
  0x76   :  { %v37_v11 = vpop.xlane.xlu0 %36 }
  0x77   :  { %v48_v12 = vmul.f32 %v47_v10, %v37_v11 }
  0x79   :  { %v50_v13 = vsub.f32 %v32_v0, %v48_v12 }
  0x7b   :  { %v52_v14 = vmul.f32 %v50_v13, %v50_v13 }
  0x7d   :  { %v54_v15 = vsel %vm34_vm0, %v52_v14, 0.0 }
  0x7e   :  { %55 = vadd.xlane.f32.xlu1 %v54_v15  ;;  %v40_v16 = vpop.xlane.xlu0 %39 }
  0x7f   :  { %v49_v17 = vmul.f32 %v47_v10, %v40_v16 }
  0x81   :  { %v51_v18 = vsub.f32 %v33_v2, %v49_v17  ;;  %v363_v17 = vld [vmem:[%s528_s5 + $0x10] sm:$0xff] }
  0x82   :  { %282 = vmatpush.bf16.msra.mxu1 %v363_v17 }
  0x83   :  { %v53_v19 = vmul.f32 %v51_v18, %v51_v18 }
  0x85   :  { %v57_v20 = vsel %vm34_vm0, %v53_v19, 0.0 }
  0x86   :  { %58 = vadd.xlane.f32.xlu1 %v57_v20 }
  0xf1   :  { %v56_v21 = vpop.xlane.xlu1 %55 }
  0xf2   :  { %v60_v22 = vmul.f32 %v56_v21, %v47_v10 }
  0xf4   :  { %v62_v23 = vadd.f32 1e-05, %v60_v22 }
  0xf6   :  { %376 = vrsqrt.f32 %v62_v23  ;;  %vm70_vm3 = vweird.f32 %v62_v23 }
  0xf9   :  { %v59_v25 = vpop.xlane.xlu1 %58 }
  0xfa   :  { %v61_v26 = vmul.f32 %v59_v25, %v47_v10  ;;  %v362_v25 = vld [vmem:[%s528_s5 + $0x8] sm:$0xff] }
  0xfb   :  { %283 = vmatpush.bf16.msra.mxu1 %v362_v25 }
  0xfc   :  { %v377_v28 = vpop.eup %376  ;;  %v63_v29 = vadd.f32 1e-05, %v61_v26 }
  0xfd   :  { %v65_v30 = vmul.f32 %v377_v28, %v62_v23  ;;  %vm71_vm2 = vweird.f32 %v377_v28 }
  0xfe   :  { %378 = vrsqrt.f32 %v63_v29  ;;  %vm72_vm4 = vmor %vm70_vm3, %vm71_vm2  ;;  %vm80_vm7 = vweird.f32 %v63_v29  ;;  %vm273_vm2 = vcmask 523264  }
  0xff   :  { %v66_v31 = vmul.f32 %v377_v28, %v65_v30 }
 0x101   :  { %v67_v32 = vmul.f32 0.5, %v66_v31  ;;  %v361_v31 = vld [vmem:[%s528_s5] sm:$0xff] }
 0x102   :  { %284 = vmatpush.bf16.msra.mxu1 %v361_v31 }
 0x103   :  { %v68_v33 = vsub.f32 1.5, %v67_v32 }
 0x104   :  { %v379_v34 = vpop.eup %378 }
 0x105   :  { %v69_v35 = vmul.f32 %v377_v28, %v68_v33  ;;  %v75_v36 = vmul.f32 %v379_v34, %v63_v29  ;;  %vm81_vm5 = vweird.f32 %v379_v34 }
 0x106   :  { %vm82_vm8 = vmor %vm80_vm7, %vm81_vm5 }
 0x107   :  { %v73_v38 = vsel %vm72_vm4, %v377_v28, %v69_v35  ;;  %v76_v39 = vmul.f32 %v379_v34, %v75_v36 }
 0x108   :  { %v84_v41 = vmul.f32 %v73_v38, %v50_v13 }
 0x109   :  { %v77_v42 = vmul.f32 0.5, %v76_v39 }
 0x10a   :  { %v90_v43 = vmul.f32 %v370_v37, %v84_v41 }
 0x10b   :  { %v78_v44 = vsub.f32 1.5, %v77_v42 }
 0x10c   :  { %v96_v45 = vadd.f32 %v371_v40, %v90_v43 }
 0x10d   :  { %v79_v46 = vmul.f32 %v379_v34, %v78_v44 }
 0x10e   :  { %v98_v47 = vpack.c.bf16 %v96_v45, %v96_v45 }
 0x10f   :  { %v83_v48 = vsel %vm82_vm8, %v379_v34, %v79_v46 }
 0x110   :  { %101 = vst.msk [vmem:[#allocation2] sm:$0xf] %vm100_vm6, %v98_v47  ;;  %v85_v49 = vmul.f32 %v83_v48, %v51_v18 }
 0x112   :  { %v91_v50 = vmul.f32 %v370_v37, %v85_v49  ;;  %v411_v37 = vmov 0.0  }
 0x113   :  { %103 = vst.msk [vmem:[#allocation3] sm:$0xff] %vm34_vm0, %v411_v37 }
 0x114   :  { %v97_v51 = vadd.f32 %v371_v40, %v91_v50  ;;  %104 = vst.msk [vmem:[#allocation3 + $0x8] sm:$0xff] %vm34_vm0, %v411_v37 }
 0x116   :  { %v99_v52 = vpack.c.bf16 %v97_v51, %v97_v51 }
 0x118   :  { %102 = vst.msk [vmem:[#allocation2 + $0x4] sm:$0xf] %vm100_vm6, %v99_v52 }
 0x11f   :  { %v358_v53 = vld [vmem:[#allocation2] sm:$0xff] }
 0x120   :  { %338 = vmatmul.msk.bf16.vlgmr.msra.gmra.mxu0 %vm34_vm0, %v358_v53 }
 0x19d   :  { %v145_v55 = vpop.f32.mrf.mxu0 }
 0x19e   :  { %v481_v56 = vadd.f32 %v372_v54, %v145_v55 }
 0x1a0   :  { %v484_v57 = vmul.f32 0.70710677, %v481_v56 }
 0x1a2   :  { %v154_v58 = vmul.f32 %v484_v57, %v484_v57 }
 0x1a4   :  { %v155_v59 = vmin.f32 %v154_v58, 16.0 }
 0x1a5   :  { %v147_v60 = vpop.f32.mrf.mxu0 }
 0x1a6   :  { %v156_v61 = vmul.f32 2.1237322e-06, %v155_v59  ;;  %v167_v62 = vmul.f32 3.8918573e-05, %v155_v59  ;;  %v488_v63 = vadd.f32 %v372_v54, %v147_v60 }
 0x1a8   :  { %v157_v0 = vadd.f32 0.00028619796, %v156_v61  ;;  %v168_v1 = vadd.f32 0.001143296, %v167_v62  ;;  %v491_v2 = vmul.f32 0.70710677, %v488_v63 }
 0x1aa   :  { %v169_v3 = vmul.f32 %v168_v1, %v155_v59  ;;  %v194_v4 = vmul.f32 %v491_v2, %v491_v2  ;;  %v158_v5 = vmul.f32 %v157_v0, %v155_v59 }
 0x1ac   :  { %v170_v6 = vadd.f32 0.014752088, %v169_v3  ;;  %v195_v7 = vmin.f32 %v194_v4, 16.0  ;;  %v159_v12 = vadd.f32 0.0036580483, %v158_v5 }
 0x1ae   :  { %v171_v8 = vmul.f32 %v170_v6, %v155_v59  ;;  %v196_v10 = vmul.f32 2.1237322e-06, %v195_v7  ;;  %v207_v11 = vmul.f32 3.8918573e-05, %v195_v7  ;;  %v160_v20 = vmul.f32 %v159_v12, %v155_v59 }
 0x1af   :  { %v150_v12 = vmul.f32 0.5, %v481_v56 }
 0x1b0   :  { %v172_v13 = vadd.f32 0.112945676, %v171_v8  ;;  %v197_v14 = vadd.f32 0.00028619796, %v196_v10  ;;  %v208_v15 = vadd.f32 0.001143296, %v207_v11 }
 0x1b1   :  { %v161_v27 = vadd.f32 0.05243302, %v160_v20 }
 0x1b2   :  { %v173_v16 = vmul.f32 %v172_v13, %v155_v59  ;;  %v198_v18 = vmul.f32 %v197_v14, %v195_v7  ;;  %v209_v19 = vmul.f32 %v208_v15, %v195_v7  ;;  %v151_v13 = vmul.f32 0.5, %v488_v63 }
 0x1b3   :  { %v162_v33 = vmul.f32 %v161_v27, %v155_v59 }
 0x1b4   :  { %v174_v21 = vadd.f32 0.4994258, %v173_v16  ;;  %v199_v22 = vadd.f32 0.0036580483, %v198_v18  ;;  %v210_v23 = vadd.f32 0.014752088, %v209_v19 }
 0x1b5   :  { %v163_v39 = vadd.f32 0.18741608, %v162_v33  ;;  %v238_v18 = vld [vmem:[#allocation3] sm:$0xff] }
 0x1b6   :  { %v175_v24 = vmul.f32 %v174_v21, %v155_v59  ;;  %v211_v26 = vmul.f32 %v210_v23, %v195_v7  ;;  %v200_v29 = vmul.f32 %v199_v22, %v195_v7  ;;  %v373_v21 = vld [vmem:[%s529_s6] ss:$0 sm:$0xff]  ;;  %s413_s6 = smov 128  }
 0x1b7   :  { %v164_v44 = vmul.f32 %v163_v39, %v155_v59 }
 0x1b8   :  { %v176_v28 = vadd.f32 1.0, %v175_v24  ;;  %v212_v30 = vadd.f32 0.112945676, %v211_v26  ;;  %v201_v34 = vadd.f32 0.05243302, %v200_v29 }
 0x1b9   :  { %v165_v50 = vadd.f32 1.1283791, %v164_v44 }
 0x1ba   :  { %380 = vrcp.f32 %v176_v28  ;;  %v213_v32 = vmul.f32 %v212_v30, %v195_v7  ;;  %v202_v41 = vmul.f32 %v201_v34, %v195_v7  ;;  %v188_v46 = vand.u32 2147483648, %v176_v28 }
 0x1bb   :  { %v186_v48 = vand.u32 2147483647, %v176_v28  ;;  %vm182_vm10 = vweird.f32 %v176_v28  ;;  %v166_v60 = vmul.f32 %v165_v50, %v484_v57 }
 0x1bc   :  { %v214_v35 = vadd.f32 0.4994258, %v213_v32  ;;  %v203_v47 = vadd.f32 0.18741608, %v202_v41  ;;  %v189_v53 = vor.u32 1.1754944e-38, %v188_v46 }
 0x1bd   :  { %vm187_vm12 = vcmp.eq.f32.partialorder %v186_v48, 8.507059e+37 }
 0x1be   :  { %v215_v36 = vmul.f32 %v214_v35, %v195_v7  ;;  %v204_v54 = vmul.f32 %v203_v47, %v195_v7 }
 0x1c0   :  { %v381_v38 = vpop.eup %380  ;;  %v216_v42 = vadd.f32 1.0, %v215_v36  ;;  %v205_v59 = vadd.f32 1.1283791, %v204_v54 }
 0x1c1   :  { %v178_v40 = vmul.f32 %v381_v38, %v176_v28  ;;  %vm183_vm9 = vweird.f32 %v381_v38 }
 0x1c2   :  { %382 = vrcp.f32 %v216_v42  ;;  %vm184_vm11 = vmor %vm182_vm10, %vm183_vm9  ;;  %v228_v62 = vand.u32 2147483648, %v216_v42  ;;  %v226_v3 = vand.u32 2147483647, %v216_v42  ;;  %vm222_vm14 = vweird.f32 %v216_v42 }
 0x1c3   :  { %v179_v43 = vsub.f32 1.0, %v178_v40  ;;  %v206_v8 = vmul.f32 %v205_v59, %v491_v2  ;;  %v239_v2 = vld [vmem:[#allocation3 + $0x8] sm:$0xff] }
 0x1c4   :  { %v229_v5 = vor.u32 1.1754944e-38, %v228_v62  ;;  %vm227_vm1 = vcmp.eq.f32.partialorder %v226_v3, 8.507059e+37 }
 0x1c5   :  { %v180_v45 = vmul.f32 %v381_v38, %v179_v43 }
 0x1c7   :  { %v181_v49 = vadd.f32 %v381_v38, %v180_v45 }
 0x1c8   :  { %v383_v51 = vpop.eup %382 }
 0x1c9   :  { %v185_v52 = vsel %vm184_vm11, %v381_v38, %v181_v49  ;;  %v218_v55 = vmul.f32 %v383_v51, %v216_v42  ;;  %vm223_vm13 = vweird.f32 %v383_v51 }
 0x1ca   :  { %v190_v58 = vsel %vm187_vm12, %v189_v53, %v185_v52  ;;  %vm224_vm15 = vmor %vm222_vm14, %vm223_vm13 }
 0x1cb   :  { %v219_v61 = vsub.f32 1.0, %v218_v55  ;;  %v191_v0 = vmul.f32 %v190_v58, %v166_v60 }
 0x1cd   :  { %v220_v1 = vmul.f32 %v383_v51, %v219_v61  ;;  %v339_v6 = vclamps-f32 %v191_v0, 1.0 }
 0x1cf   :  { %v221_v4 = vadd.f32 %v383_v51, %v220_v1  ;;  %v234_v11 = vadd.f32 1.0, %v339_v6 }
 0x1d1   :  { %v225_v7 = vsel %vm224_vm15, %v383_v51, %v221_v4  ;;  %v236_v15 = vmul.f32 %v234_v11, %v150_v12 }
 0x1d2   :  { %v230_v9 = vsel %vm227_vm1, %v229_v5, %v225_v7 }
 0x1d3   :  { %v231_v10 = vmul.f32 %v230_v9, %v206_v8 }
 0x1d5   :  { %v340_v57 = vclamps-f32 %v231_v10, 1.0 }
 0x1d7   :  { %v235_v14 = vadd.f32 1.0, %v340_v57 }
 0x1d9   :  { %v237_v16 = vmul.f32 %v235_v14, %v151_v13 }
 0x1db   :  { %v240_v17 = vpack.c.bf16 %v237_v16, %v236_v15 }
 0x1dd   :  { %357 = vmatmul.msk.bf16.vlgmr.msra.gmra.mxu1 %vm273_vm2, %v240_v17 }
 0x25a   :  { %v286_v19 = vpop.f32.mrf.mxu1 }
 0x25b   :  { %v291_v20 = vadd.f32 %v286_v19, %v238_v18 }
 0x25d   :  { %293 = vst.msk [vmem:[#allocation3] sm:$0xff] %vm34_vm0, %v291_v20 }
 0x262   :  { %v288_v22 = vpop.f32.mrf.mxu1 }
 0x263   :  { %v292_v56 = vadd.f32 %v288_v22, %v239_v2 }
 0x264   :  { %v298_v23 = vld [vmem:[#allocation3] sm:$0xff] }
 0x265   :  { %294 = vst.msk [vmem:[#allocation3 + $0x8] sm:$0xff] %vm34_vm0, %v292_v56  ;;  %v304_v63 = vadd.f32 %v373_v21, %v298_v23 }
 0x267   :  { %306 = vst.msk [vmem:[#allocation4] sm:$0xff] %vm34_vm0, %v304_v63 }
 0x26c   :  { %v299_v24 = vld [vmem:[#allocation3 + $0x8] sm:$0xff] }
 0x26d   :  { %v305_v25 = vadd.f32 %v373_v21, %v299_v24 }
 0x26f   :  { %307 = vst.msk [vmem:[#allocation4 + $0x8] sm:$0xff] %vm34_vm0, %v305_v25 }
 0x270   :  { %320 = dma.vmem_to_hbm [thread:$0]  %s313_s20, 256, %s315_s23, [#allocation5], %s413_s6, %s413_s6, %s414_s24  }
 0x271   :  { %408 = dma.done.wait [#allocation5], 256  }
 0x272   :  { %409 = vsyncadd [#allocation5], 4294967040 }
 0x273   :  { %325 = vsyncpa [#allocation5], 1 }

</bundles_post_ra>
